<compile_context>
chip_gen: v7x
topology: tpu7x:2x2x1
jax: 0.10.0
libtpu: 0.0.40
codegen_flags: <defaults>
</compile_context>

<pallas_src>
import functools
import math

import jax
import jax.numpy as jnp
from jax.experimental import pallas as pl
from jax.experimental.pallas import tpu as pltpu


def _round_up(x, m):
    return ((x + m - 1) // m) * m


def _sublane_multiple(dtype):
    # Minimum second-to-last block-dim multiple per element width.
    return {4: 8, 2: 16, 1: 32}.get(jnp.dtype(dtype).itemsize, 8)


def _linear_bias_kernel(x_ref, w_ref, b_ref, o_ref):
    # x_ref: (tm, K)   w_ref: (K, tn)   b_ref: (1, tn)   o_ref: (tm, tn)
    acc = jnp.dot(x_ref[...], w_ref[...], preferred_element_type=jnp.float32)
    o_ref[...] = (acc + b_ref[...].astype(jnp.float32)).astype(o_ref.dtype)


def _linear_nobias_kernel(x_ref, w_ref, o_ref):
    o_ref[...] = jnp.dot(
        x_ref[...], w_ref[...], preferred_element_type=jnp.float32
    ).astype(o_ref.dtype)


_VMEM_BUDGET = 26 * 1024 * 1024        # double-buffered working-set budget
_W_RESIDENT_BUDGET = 20 * 1024 * 1024  # max double-buffered full weight


@functools.partial(jax.jit, static_argnames=("tm_cap",))
def linear_norm_forward(x, w_t, bias=None, *, tm_cap=512):
    """y = x @ w_t + bias  (== x @ weight.T + bias, weight = w_t.T).

    x:    (..., in_dim)
    w_t:  (in_dim, out_dim)  -- PyTorch weight transposed ONCE at init time
    bias: (out_dim,) or None
    """
    in_dim, out_dim = w_t.shape
    assert x.shape[-1] == in_dim
    lead = x.shape[:-1]
    m = int(math.prod(lead)) if lead else 1
    x2d = x.reshape(m, in_dim)

    x_item = jnp.dtype(x.dtype).itemsize
    w_item = jnp.dtype(w_t.dtype).itemsize
    o_item = x_item
    b_item = jnp.dtype(bias.dtype).itemsize if bias is not None else 0
    sub = _sublane_multiple(x.dtype)

    # ---- N tile: keep the whole weight VMEM-resident whenever it fits. ------
    if 2 * in_dim * out_dim * w_item <= _W_RESIDENT_BUDGET or out_dim <= 512:
        tn = out_dim                 # grid_n == 1 -> W is DMA'd exactly once
    else:
        tn = 512                     # lane-dense 128-multiple N blocks
    # TODO(synk): a K-blocked accumulator path would be needed for very large
    # in_dim (K strip exceeding VMEM); FastPitch LinearNorm dims never hit it.

    # ---- M tile: as large as the double-buffered VMEM budget allows. --------
    tm = min(tm_cap, _round_up(m, sub))
    if tm >= m:
        tm = m                       # one full-M block (always a legal block)

    def working_set(tm_):
        return (2 * tm_ * in_dim * x_item      # x strip   (double buffered)
                + 2 * in_dim * tn * w_item     # weight block
                + 2 * tm_ * tn * o_item        # output tile
                + 2 * tn * b_item)             # bias tile

    while tm > sub and working_set(tm) > _VMEM_BUDGET:
        tm = max(sub, _round_up(tm // 2, sub))

    grid = (pl.cdiv(m, tm), pl.cdiv(out_dim, tn))

    in_specs = [
        pl.BlockSpec((tm, in_dim), lambda i, j: (i, 0)),   # x: streams once
        pl.BlockSpec((in_dim, tn), lambda i, j: (0, j)),   # W: resident if grid_n==1
    ]
    operands = [x2d, w_t]
    if bias is not None:
        in_specs.append(pl.BlockSpec((1, tn), lambda i, j: (0, j)))
        operands.append(bias.reshape(1, out_dim))
        kernel = _linear_bias_kernel
    else:
        kernel = _linear_nobias_kernel

    cost = pl.CostEstimate(
        flops=2 * m * out_dim * in_dim,
        transcendentals=0,
        bytes_accessed=(m * in_dim * x_item + in_dim * out_dim * w_item
                        + m * out_dim * o_item + out_dim * b_item),
    )

    out = pl.pallas_call(
        kernel,
        out_shape=jax.ShapeDtypeStruct((m, out_dim), x.dtype),
        grid_spec=pltpu.PrefetchScalarGridSpec(
            num_scalar_prefetch=0,
            grid=grid,
            in_specs=in_specs,
            out_specs=pl.BlockSpec((tm, tn), lambda i, j: (i, j)),
        ),
        compiler_params=pltpu.CompilerParams(
            # M/N tiles are independent -> shard across v7x's two TCs.
            dimension_semantics=("parallel", "parallel"),
            # Explicit limit: raises v5e's 16 MiB default, safe on v6e/v7x.
            vmem_limit_bytes=32 * 1024 * 1024,
        ),
        cost_estimate=cost,
    )(*operands)

    return out.reshape(*lead, out_dim)


def init_linear_norm_params(key, in_dim, out_dim, bias=True, w_init_gain="linear"):
    """Parameter init mirroring the PyTorch module (xavier_uniform_, gain=1)."""
    gain = 1.0  # torch.nn.init.calculate_gain('linear') == 1.0
    k_w, k_b = jax.random.split(key)
    a = gain * math.sqrt(6.0 / (in_dim + out_dim))
    weight = jax.random.uniform(
        k_w, (out_dim, in_dim), minval=-a, maxval=a, dtype=jnp.float32
    )
    if bias:
        bound = 1.0 / math.sqrt(in_dim)  # torch.nn.Linear default bias init
        b = jax.random.uniform(
            k_b, (out_dim,), minval=-bound, maxval=bound, dtype=jnp.float32
        )
    else:
        b = None
    return weight, b


if __name__ == "__main__":
    key = jax.random.PRNGKey(0)
    k_x, k_p = jax.random.split(key)

    batch, seq, in_dim, out_dim = 2, 8, 32, 64
    x = jax.random.normal(k_x, (batch, seq, in_dim), dtype=jnp.float32)

    weight, bias = init_linear_norm_params(
        k_p, in_dim, out_dim, bias=True, w_init_gain="linear"
    )
    # One-time weight layout prep (outside the jitted forward): (in_dim, out_dim)
    w_t = jnp.asarray(weight.T)

    # With bias (default LinearNorm configuration).
    y = linear_norm_forward(x, w_t, bias)
    y = jax.block_until_ready(y)
    y_ref = x @ weight.T + bias
    assert y.shape == (batch, seq, out_dim)
    assert jnp.allclose(y, y_ref, atol=1e-5, rtol=1e-5)

    # bias=False path (skips the bias operand entirely).
    y_nb = linear_norm_forward(x, w_t, None)
    y_nb = jax.block_until_ready(y_nb)
    assert jnp.allclose(y_nb, x @ weight.T, atol=1e-5, rtol=1e-5)

    print("KERNEL_OK")
</pallas_src>

<mosaic_0001>
module attributes {stable_mosaic.version = 11 : i64} {
  func.func @_linear_bias_kernel(%arg0: i32, %arg1: i32, %arg2: memref<16x32xf32, #tpu.memory_space<vmem>>, %arg3: memref<32x64xf32, #tpu.memory_space<vmem>>, %arg4: memref<1x64xf32, #tpu.memory_space<vmem>>, %arg5: memref<16x64xf32, #tpu.memory_space<vmem>>) attributes {dimension_semantics = [#tpu.dimension_semantics<parallel>, #tpu.dimension_semantics<parallel>], iteration_bounds = array<i64: 1, 1>, scalar_prefetch = 0 : i64, scratch_operands = 0 : i64, tpu.core_type = #tpu.core_type<tc>, window_params = [{transform_indices = @transform_0, window_bounds = array<i64: 16, 32>}, {transform_indices = @transform_1, window_bounds = array<i64: 32, 64>}, {transform_indices = @transform_2, window_bounds = array<i64: 1, 64>}, {transform_indices = @transform_3, window_bounds = array<i64: 16, 64>}]} {
    %c0 = arith.constant 0 : index
    %c0_0 = arith.constant 0 : index
    %0 = vector.load %arg2[%c0, %c0_0] : memref<16x32xf32, #tpu.memory_space<vmem>>, vector<16x32xf32>
    %c0_1 = arith.constant 0 : index
    %c0_2 = arith.constant 0 : index
    %1 = vector.load %arg3[%c0_1, %c0_2] : memref<32x64xf32, #tpu.memory_space<vmem>>, vector<32x64xf32>
    %cst = arith.constant dense<0.000000e+00> : vector<16x64xf32>
    %2 = tpu.matmul %0, %1, %cst {dimension_numbers = #tpu.dot_dimension_numbers<[1], [0], [0], [1], [0, 0, 1, 1], [], []>} : vector<16x32xf32>, vector<32x64xf32>, vector<16x64xf32> -> vector<16x64xf32>
    %c0_3 = arith.constant 0 : index
    %c0_4 = arith.constant 0 : index
    %3 = vector.load %arg4[%c0_3, %c0_4] : memref<1x64xf32, #tpu.memory_space<vmem>>, vector<1x64xf32>
    %4 = vector.broadcast %3 : vector<1x64xf32> to vector<16x64xf32>
    %5 = arith.addf %2, %4 : vector<16x64xf32>
    %c0_5 = arith.constant 0 : index
    %c0_6 = arith.constant 0 : index
    %6 = vector.load %arg5[%c0_5, %c0_6] : memref<16x64xf32, #tpu.memory_space<vmem>>, vector<16x64xf32>
    tpu.vector_store %arg5[%c0_5, %c0_6], %5 {strides = array<i32>} : memref<16x64xf32, #tpu.memory_space<vmem>>, vector<16x64xf32>,
    return
  }
  func.func @transform_0(%arg0: i32, %arg1: i32) -> (i32, i32) {
    %c0_i32 = arith.constant 0 : i32
    %c0_i32_0 = arith.constant 0 : i32
    return %arg0, %c0_i32 : i32, i32
  }
  func.func @transform_1(%arg0: i32, %arg1: i32) -> (i32, i32) {
    %c0_i32 = arith.constant 0 : i32
    %c0_i32_0 = arith.constant 0 : i32
    return %c0_i32, %arg1 : i32, i32
  }
  func.func @transform_2(%arg0: i32, %arg1: i32) -> (i32, i32) {
    %c0_i32 = arith.constant 0 : i32
    %c0_i32_0 = arith.constant 0 : i32
    return %c0_i32, %arg1 : i32, i32
  }
  func.func @transform_3(%arg0: i32, %arg1: i32) -> (i32, i32) {
    %c0_i32 = arith.constant 0 : i32
    return %arg0, %arg1 : i32, i32
  }
}

</mosaic_0001>

<bundles_post_ra>
// kernel: linear_norm_forward.1
= control target key start
LH: loop header
LB: loop body
LE: loop exit
PB: predicated region body
PF: predicated region fallthrough
CT: control target
= control target key end

     0   :  { %8 = vsyncpa [#allocation3], 0  ;;  %s337_s0 = inlined_call_operand.hbm [shape: f32[16,32], index: 0, kind: input, shape index: {}]   ;;  %s338_s1 = inlined_call_operand.hbm [shape: f32[32,64], index: 1, kind: input, shape index: {}]   ;;  %s339_s2 = inlined_call_operand.vmem [shape: f32[1,64], index: 2, kind: input, shape index: {}]   ;;  %s340_s3 = inlined_call_operand.hbm [shape: f32[16,64], index: 3, kind: output, shape index: {}]  }
   0x1   :  { %9 = vsyncpa [#allocation6], 0 }
   0x2   :  { %10 = vsyncpa [#allocation4], 0  ;;  %s264_s12 = smov [#allocation2]   ;;  %s192_s16 = scalar_lea.hbm %s337_s0, 256 }
   0x3   :  { %s16_s13 = sshll.u32 %s264_s12, 4  ;;  %p193_p0 = scmp.ne.s32.totalorder %s337_s0, %s192_s16  ;;  %s17_s13 = int_to_ptr.vmem [resolvable:$true] %s16_s13 }
   0x4   :  { %p196_p1 = scmp.lt.u32.totalorder %s192_s16, %s337_s0 }
   0x6   :  { %p198_p2 = pnand %p196_p1, %p193_p0 }
   0x8   :  { %201 = shalt.err (!%p198_p2)
}
   0x9   :  { %s202_s21 = scalar_lea.vmem %s17_s13, 256  ;;  %p207_p4 = scmp.lt.s32.totalorder %s17_s13, %s17_s13 }
   0xa   :  { %p203_p3 = scmp.ne.s32.totalorder %s17_s13, %s202_s21  ;;  %p208_p5 = scmp.lt.s32.totalorder %s202_s21, %s202_s21 }
   0xc   :  { %p209_p6 = por %p208_p5, %p207_p4 }
   0xe   :  { %p210_p7 = pnand %p209_p6, %p203_p3 }
  0x10   :  { %213 = shalt.err (!%p210_p7)
}
  0x11   :  { %s265_s22 = smov 128   ;;  %s266_s23 = smov 8  }
  0x12   :  { %22 = dma.hbm_to_vmem [thread:$0]  %s337_s0, 256, %s17_s13, [#allocation3], %s265_s22, %s265_s22, %s266_s23  }
  0x13   :  { %s267_s26 = smov [#allocation5]   ;;  %s214_s30 = scalar_lea.hbm %s338_s1, 512 }
  0x14   :  { %s28_s27 = sshll.u32 %s267_s26, 4  ;;  %p215_p8 = scmp.ne.s32.totalorder %s338_s1, %s214_s30  ;;  %s29_s27 = int_to_ptr.vmem [resolvable:$true] %s28_s27 }
  0x15   :  { %p218_p9 = scmp.lt.u32.totalorder %s214_s30, %s338_s1 }
  0x17   :  { %p220_p10 = pnand %p218_p9, %p215_p8 }
  0x19   :  { %223 = shalt.err (!%p220_p10)
}
  0x1a   :  { %s224_s8 = scalar_lea.vmem %s29_s27, 512  ;;  %p229_p12 = scmp.lt.s32.totalorder %s29_s27, %s29_s27 }
  0x1b   :  { %p225_p11 = scmp.ne.s32.totalorder %s29_s27, %s224_s8  ;;  %p230_p13 = scmp.lt.s32.totalorder %s224_s8, %s224_s8 }
  0x1d   :  { %p231_p0 = por %p230_p13, %p229_p12 }
  0x1f   :  { %p232_p1 = pnand %p231_p0, %p225_p11 }
  0x21   :  { %235 = shalt.err (!%p232_p1)
}
  0x22   :  { %34 = dma.hbm_to_vmem [thread:$0]  %s338_s1, 512, %s29_s27, [#allocation6], %s265_s22, %s265_s22, %s266_s23  }
  0x23   :  { %258 = dma.done.wait [#allocation3], 256  }
  0x24   :  { %259 = vsyncadd [#allocation3], 4294967040 }
  0x25   :  { %260 = dma.done.wait [#allocation6], 512  }
  0x26   :  { %261 = vsyncadd [#allocation6], 4294966784  ;;  %vm56_vm0 = vcmask 261120   ;;  %v45_v0 = vld [vmem:[#allocation5] sm:$0xff]  ;;  %v46_v1 = vld [vmem:[#allocation5 + $0x8] sm:$0xff]  ;;  %s268_s11 = smov [#allocation7]  }
  0x27   :  { %v47_v2 = vld [vmem:[#allocation5 + $0x10] sm:$0xff]  ;;  %v179_v3 = vpack.c.bf16 %v46_v1, %v45_v0  ;;  %v48_v4 = vld [vmem:[#allocation5 + $0x18] sm:$0xff]  ;;  %s146_s12 = sshll.u32 %s268_s11, 4  ;;  %vm138_vm1 = vcmask 523264   ;;  %s147_s12 = int_to_ptr.vmem [resolvable:$true] %s146_s12 }
  0x28   :  { %v43_v5 = vld [vmem:[#allocation2] sm:$0xff]  ;;  %v183_v6 = vpack.c.bf16 %v48_v4, %v47_v2  ;;  %v44_v7 = vld [vmem:[#allocation2 + $0x8] sm:$0xff]  ;;  %s236_s13 = scalar_lea.vmem %s147_s12, 256  ;;  %p241_p3 = scmp.lt.s32.totalorder %s147_s12, %s147_s12 }
  0x29   :  { %176 = vmatprep.mubr.msk.f32.mxu0 %vm56_vm0, %v43_v5  ;;  %180 = vmatprep.subr.bf16.mxu0 %v179_v3  ;;  %v159_v8 = vld [vmem:[%s339_s2] ss:$0 sm:$0xff]  ;;  %p237_p2 = scmp.ne.s32.totalorder %s147_s12, %s236_s13  ;;  %p242_p4 = scmp.lt.s32.totalorder %s236_s13, %s236_s13 }
  0x2a   :  { %182 = vmatpush3.bf16.msra.mxu0 %v179_v3 }
  0x2b   :  { %184 = vmatprep.subr.bf16.mxu0 %v183_v6  ;;  %p243_p5 = por %p242_p4, %p241_p3 }
  0x2d   :  { %p244_p6 = pnand %p243_p5, %p237_p2 }
  0x2e   :  { %186 = vmatpush3.bf16.msra.mxu0 %v183_v6 }
  0x31   :  { %177 = vmatmul.mubr.msk.f32.vlgmr.msra.gmra.mrb[0].mxu0 %vm56_vm0, %v44_v7 }
 0x104   :  { %v178_v9 = vpop.f32.mrb[0].mxu0 }
 0x105   :  { %v135_v10 = vadd.f32 %v178_v9, %v159_v8  ;;  %v129_v11 = vpop.f32.mrb[1].mxu0 }
 0x106   :  { %v130_v12 = vadd.f32 %v159_v8, %v129_v11 }
 0x107   :  { %140 = vst.msk [vmem:[#allocation7 + $0x8] sm:$0xff] %vm138_vm1, %v135_v10 }
 0x108   :  { %139 = vst.msk [vmem:[#allocation7] sm:$0xff] %vm138_vm1, %v130_v12 }
 0x109   :  { %247 = shalt.err (!%p244_p6)
}
 0x10a   :  { %s248_s2 = scalar_lea.hbm %s340_s3, 256 }
 0x10b   :  { %p249_p7 = scmp.ne.s32.totalorder %s340_s3, %s248_s2  ;;  %p252_p8 = scmp.lt.u32.totalorder %s248_s2, %s340_s3 }
 0x10d   :  { %p254_p9 = pnand %p252_p8, %p249_p7 }
 0x10f   :  { %257 = shalt.err (!%p254_p9)
}
 0x110   :  { %152 = dma.vmem_to_hbm [thread:$0]  %s147_s12, 256, %s340_s3, [#allocation4], %s265_s22, %s265_s22, %s266_s23  }
 0x111   :  { %262 = dma.done.wait [#allocation4], 256  }
 0x112   :  { %263 = vsyncadd [#allocation4], 4294967040 }
 0x113   :  { %156 = vsyncpa [#allocation3], 1 }
 0x114   :  { %157 = vsyncpa [#allocation6], 1 }
 0x115   :  { %158 = vsyncpa [#allocation4], 1 }

</bundles_post_ra>
